<compile_context>
chip_gen: v7x
topology: tpu7x:2x2x1
jax: 0.10.0
libtpu: 0.0.40
codegen_flags: <defaults>
</compile_context>

<pallas_src>
import functools
from collections import OrderedDict

import jax
import jax.numpy as jnp
from jax.experimental import pallas as pl
from jax.experimental.pallas import tpu as pltpu


def _round_up(x, m):
    return ((x + m - 1) // m) * m


def _round_down(x, m):
    return (x // m) * m


@functools.lru_cache(maxsize=None)
def _vmem_caps():
    """Returns (vmem_budget_bytes, max_tile_rows, small_vmem_hint), generation aware."""
    try:
        cap = int(pltpu.get_tpu_info().vmem_capacity_bytes)
    except Exception:
        # Conservative fallback: the scoped default (32 MiB) and moderate tiles.
        return 32 * 1024 * 1024, 2048, False
    small = cap <= 64 * 1024 * 1024            # v7x-class TC: 64 MiB VMEM, 2 TCs per chip
    budget = (cap * 3) // 4                    # ~48 MiB on v7x, ~96 MiB on v5e/v6e
    budget = max(min(budget, 100 * 1024 * 1024), 16 * 1024 * 1024)
    max_tile = 4096 if small else 8192
    return budget, max_tile, small


def _pick_tile_n(n_rows, kcin, cout_p, in_bytes=2, out_bytes=2):
    """Row-tile size for the conv kernel, sized from the VMEM budget."""
    budget, max_tile, small_vmem = _vmem_caps()
    # Per-row VMEM cost: double-buffered activation tile + double-buffered output tile.
    per_row = 2 * kcin * in_bytes + 2 * cout_p * out_bytes
    # Grid-invariant operands (assume 2 buffers for weight/bias) + compiler slack.
    # NOTE: weight/bias have constant index_maps; pipeline_mode=pl.Buffered(1) would reclaim
    # their second buffer once K*Cin / Cout grow past toy sizes (left at the default here).
    fixed = 2 * kcin * cout_p * in_bytes + 2 * cout_p * 4 + (4 << 20)
    tn = max((budget - fixed) // max(per_row, 1), 256)
    tn = min(tn, max_tile)
    if small_vmem and n_rows >= 64:
        # v7x: keep >=2 grid steps so the "parallel" N axis feeds both TensorCores.
        tn = min(tn, max(16, _round_down(n_rows // 2, 16)))
    tn = min(tn, _round_up(n_rows, 16))
    tn = max(16, _round_down(tn, 16))          # bf16 sublane granule
    return tn, budget


# ----------------------------------------------------------------------------
# Pallas kernels
# ----------------------------------------------------------------------------
def _subm_conv_kernel(g_ref, w_ref, b_ref, o_ref, *, fuse_relu):
    """One N-tile of the folded-K submanifold conv: o = relu?(g @ w + b), f32 accumulation."""
    acc = jnp.dot(g_ref[...], w_ref[...], preferred_element_type=jnp.float32)
    acc = acc + b_ref[...]                     # (1, Cout) f32 bias row broadcasts over rows
    if fuse_relu:
        acc = jnp.maximum(acc, 0.0)
    o_ref[...] = acc.astype(o_ref.dtype)


def subm_conv_pallas(gathered, weight, bias_row, *, fuse_relu=False, out_dtype=jnp.bfloat16):
    """gathered [N, K*Cin] bf16, weight [K*Cin, Cout] bf16, bias_row [1, Cout] f32 -> [N, Cout]."""
    n_rows, kcin = gathered.shape
    cout = weight.shape[1]

    # Output-width policy: for narrow Cout keep the native width (the 4-8x store amplification
    # plus the trailing slice copy of pad-to-128 costs more HBM than masked stores, especially
    # on v5e); wide-but-misaligned Cout is still padded for lane-dense stores.
    if cout % 128 == 0 or cout <= 64:
        cout_p, w_p, b_p = cout, weight, bias_row
    else:
        cout_p = _round_up(cout, 128)
        w_p = jnp.pad(weight, ((0, 0), (0, cout_p - cout)))
        b_p = jnp.pad(bias_row, ((0, 0), (0, cout_p - cout)))

    tn, vmem_budget = _pick_tile_n(n_rows, kcin, cout_p)
    grid = (pl.cdiv(n_rows, tn),)              # ragged last block: no jnp.pad copy of activations

    out = pl.pallas_call(
        functools.partial(_subm_conv_kernel, fuse_relu=fuse_relu),
        out_shape=jax.ShapeDtypeStruct((n_rows, cout_p), out_dtype),
        grid_spec=pltpu.PrefetchScalarGridSpec(
            num_scalar_prefetch=0,
            grid=grid,
            in_specs=[
                pl.BlockSpec((tn, kcin), lambda i: (i, 0)),       # bf16 activation tile
                pl.BlockSpec((kcin, cout_p), lambda i: (0, 0)),   # folded bf16 weight (invariant)
                pl.BlockSpec((1, cout_p), lambda i: (0, 0)),      # f32 bias row (invariant)
            ],
            out_specs=pl.BlockSpec((tn, cout_p), lambda i: (i, 0)),
        ),
        compiler_params=pltpu.CompilerParams(
            dimension_semantics=("parallel",),  # independent N tiles (megacore / v7x 2-TC)
            vmem_limit_bytes=int(vmem_budget),  # generation-aware, never the full v7x 64 MiB
        ),
    )(gathered, w_p, b_p)
    return out if cout_p == cout else out[:, :cout]


def _relu_kernel(x_ref, o_ref):
    o_ref[...] = jnp.maximum(x_ref[...], 0).astype(o_ref.dtype)


def relu_pallas(x, *, tile_rows=2048):
    """Tiled lane-dense ReLU (standalone path; the conv->ReLU pairs are fused in the conv)."""
    if x.size == 0:
        return x
    orig_shape, dtype, n = x.shape, x.dtype, x.size
    itemsize = jnp.dtype(dtype).itemsize
    g = 8 if itemsize >= 4 else (16 if itemsize == 2 else 32)   # sublane granule per dtype
    lanes = 128

    if x.ndim == 2 and x.shape[1] % lanes == 0 and x.shape[0] >= g:
        # Already lane-dense: no reshape / pad copies at all.
        x2, rows, cols = x, x.shape[0], x.shape[1]
        post = lambda o: o
    else:
        flat = x.reshape(-1)
        rem = (-n) % (lanes * g)
        if rem:                                 # tiny tail pad only (< lanes*g elements)
            flat = jnp.pad(flat, (0, rem))
        rows, cols = flat.shape[0] // lanes, lanes
        x2 = flat.reshape(rows, cols)
        post = lambda o: o.reshape(-1)[:n].reshape(orig_shape)

    budget, _, _ = _vmem_caps()
    max_rows = max(g, _round_down(budget // (4 * cols * itemsize), g))  # 2 in + 2 out buffers
    tr = min(_round_up(tile_rows, g), _round_down(rows, g), max_rows)
    tr = max(tr, g)

    out = pl.pallas_call(
        _relu_kernel,
        out_shape=jax.ShapeDtypeStruct((rows, cols), dtype),
        grid_spec=pltpu.PrefetchScalarGridSpec(
            num_scalar_prefetch=0,
            grid=(pl.cdiv(rows, tr),),
            in_specs=[pl.BlockSpec((tr, cols), lambda i: (i, 0))],
            out_specs=pl.BlockSpec((tr, cols), lambda i: (i, 0)),
        ),
        compiler_params=pltpu.CompilerParams(
            dimension_semantics=("parallel",),
            vmem_limit_bytes=int(budget),
        ),
    )(x2)
    return post(out)


# ----------------------------------------------------------------------------
# Sparse tensor + module framework (mirrors spconv semantics)
# ----------------------------------------------------------------------------
class SparseConvTensor:
    def __init__(self, features, indices, spatial_shape, batch_size):
        self.features = features
        self.indices = indices
        self.spatial_shape = spatial_shape
        self.batch_size = batch_size

    def replace_feature(self, new_features):
        return SparseConvTensor(
            new_features, self.indices, self.spatial_shape, self.batch_size
        )


class SparseModule:
    """Placeholder base; subclasses take the sparse tensor in SparseSequential."""

    def __init__(self, name=None):
        self.name = name


def is_spconv_module(module):
    return isinstance(module, (SparseModule,))


def _build_neighbor_table(indices, spatial_shape, batch_size, ksize, padding):
    """[K, N] int32 table of neighbor row indices into `features` (-1 = missing).

    Kept in [K, N] orientation (long axis last): a future SMEM scalar-prefetch of this table
    pads ~1.8x in this layout, whereas [N, K] would pad ~14x and overflow SMEM at production N.
    """
    H, W = spatial_shape
    N = indices.shape[0]
    grid = jnp.full((batch_size, H, W), -1, dtype=jnp.int32)
    grid = grid.at[indices[:, 0], indices[:, 1], indices[:, 2]].set(
        jnp.arange(N, dtype=jnp.int32)
    )
    nbs = []
    for dy in range(ksize):
        for dx in range(ksize):
            y = indices[:, 1] + dy - padding
            x = indices[:, 2] + dx - padding
            valid = (y >= 0) & (y < H) & (x >= 0) & (x < W)
            nb = grid[indices[:, 0], jnp.clip(y, 0, H - 1), jnp.clip(x, 0, W - 1)]
            nbs.append(jnp.where(valid, nb, -1))
    return jnp.stack(nbs, axis=0)


def _im2col_bf16(features, nb):
    """features [N, Cin] bf16, nb [K, N] -> [N, K*Cin] bf16 folded-K activation matrix.

    Single fused XLA gather+mask+transpose pass on bf16 that directly produces the MXU operand
    (no separate astype / jnp.pad copies).  See TODO(synk) at the top of the file for why the
    gather itself is not (yet) moved in-kernel.
    """
    N, Cin = features.shape
    K = nb.shape[0]
    safe = jnp.where(nb >= 0, nb, 0)
    g = jnp.take(features, safe, axis=0)                                   # [K, N, Cin]
    g = jnp.where((nb >= 0)[..., None], g, jnp.zeros((), features.dtype))
    return jnp.transpose(g, (1, 0, 2)).reshape(N, K * Cin)


class SubMConv2d(SparseModule):
    """Submanifold sparse 2D convolution (same active sites in == out), bf16 activation carry."""

    def __init__(self, in_channels, out_channels, kernel_size, padding, key):
        super().__init__()
        self.in_channels = in_channels
        self.out_channels = out_channels
        self.kernel_size = kernel_size
        self.padding = padding
        K = kernel_size * kernel_size
        kw, kb = jax.random.split(key)
        scale = 1.0 / jnp.sqrt(in_channels * K)
        self.weight = scale * jax.random.normal(
            kw, (K, in_channels, out_channels), jnp.float32
        )
        self.bias = scale * jax.random.normal(kb, (out_channels,), jnp.float32)
        # Fold K into the contraction once at init; keep the bf16 MXU copy so there is no
        # per-call weight cast/reshape pass.
        self.weight_folded = self.weight.reshape(
            K * in_channels, out_channels
        ).astype(jnp.bfloat16)
        self.bias_row = self.bias.reshape(1, out_channels).astype(jnp.float32)

    def __call__(self, sp, fuse_relu=False):
        assert isinstance(sp, SparseConvTensor)
        N = sp.features.shape[0]
        if N == 0:
            return sp.replace_feature(
                jnp.zeros((0, self.out_channels), jnp.bfloat16)
            )
        feats = sp.features
        if feats.dtype != jnp.bfloat16:      # only the first layer pays this cast
            feats = feats.astype(jnp.bfloat16)
        nb = _build_neighbor_table(
            sp.indices, sp.spatial_shape, sp.batch_size, self.kernel_size, self.padding
        )                                     # [K, N]
        gathered = _im2col_bf16(feats, nb)    # [N, K*Cin] bf16
        new_feats = subm_conv_pallas(
            gathered, self.weight_folded, self.bias_row, fuse_relu=fuse_relu
        )                                     # [N, Cout] bf16
        return sp.replace_feature(new_feats)


class ReLU:
    """Dense module: applied to .features by SparseSequential (or fused into the conv)."""

    def __call__(self, x):
        return relu_pallas(x)


class SparseSequential(SparseModule):
    def __init__(self, *args, **kwargs):
        super().__init__()
        self._modules = OrderedDict()
        if len(args) == 1 and isinstance(args[0], OrderedDict):
            for key, module in args[0].items():
                self._modules[key] = module
        else:
            for idx, module in enumerate(args):
                self._modules[str(idx)] = module
        for name, module in kwargs.items():
            if name in self._modules:
                raise ValueError("name exists.")
            self._modules[name] = module

    def __len__(self):
        return len(self._modules)

    def __getitem__(self, idx):
        if not -len(self) <= idx < len(self):
            raise IndexError("index {} is out of range".format(idx))
        if idx < 0:
            idx += len(self)
        it = iter(self._modules.values())
        for _ in range(idx):
            next(it)
        return next(it)

    def add(self, module, name=None):
        if name is None:
            name = str(len(self._modules))
            if name in self._modules:
                raise KeyError("name exists")
        self._modules[name] = module

    def forward(self, input):
        modules = list(self._modules.values())
        i = 0
        while i < len(modules):
            module = modules[i]
            if is_spconv_module(module):
                # conv -> ReLU pairs are fused into the conv epilogue (same semantics).
                if (
                    isinstance(module, SubMConv2d)
                    and i + 1 < len(modules)
                    and isinstance(modules[i + 1], ReLU)
                    and isinstance(input, SparseConvTensor)
                ):
                    input = module(input, fuse_relu=True)
                    i += 2
                    continue
                input = module(input)
            elif isinstance(input, SparseConvTensor):
                if input.indices.shape[0] != 0:
                    # upstream spconv replace_feature yields the updated tensor;
                    # intended semantics: apply the dense module to .features.
                    input = input.replace_feature(module(input.features))
            else:
                input = module(input)
            i += 1
        return input

    __call__ = forward


# ----------------------------------------------------------------------------
# Pure-JAX (f32) reference for verification
# ----------------------------------------------------------------------------
def _ref_forward(features, indices, spatial_shape, batch_size, convs):
    x = features
    for w, b, ksize, pad in convs:
        nb = _build_neighbor_table(indices, spatial_shape, batch_size, ksize, pad)
        gathered = jnp.where(
            (nb >= 0)[..., None],
            x[jnp.clip(nb, 0, x.shape[0] - 1)],
            jnp.zeros((), x.dtype),
        )
        x = jnp.einsum("knc,kcd->nd", gathered, w) + b[None, :]
        x = jnp.maximum(x, 0.0)
    return x


# ----------------------------------------------------------------------------
# Main
# ----------------------------------------------------------------------------
if __name__ == "__main__":
    key = jax.random.PRNGKey(0)
    k_idx, k_feat, k_w1, k_w2 = jax.random.split(key, 4)

    B, Cin, H, W = 2, 4, 16, 16
    per_batch = 64  # active voxels per batch element -> N = 128 total

    # deterministic unique active sites
    idx_chunks = []
    for b in range(B):
        perm = jax.random.permutation(jax.random.fold_in(k_idx, b), H * W)[:per_batch]
        ys = (perm // W).astype(jnp.int32)
        xs = (perm % W).astype(jnp.int32)
        idx_chunks.append(jnp.stack([jnp.full_like(ys, b), ys, xs], axis=1))
    indices = jnp.concatenate(idx_chunks, axis=0)  # [128, 3]
    features = jax.random.normal(k_feat, (indices.shape[0], Cin), jnp.float32)

    sp_input = SparseConvTensor(features, indices, (H, W), B)

    conv1 = SubMConv2d(Cin, 16, kernel_size=3, padding=1, key=k_w1)
    conv2 = SubMConv2d(16, 32, kernel_size=3, padding=1, key=k_w2)
    model = SparseSequential(
        OrderedDict(
            [
                ("conv1", conv1),
                ("relu1", ReLU()),
                ("conv2", conv2),
                ("relu2", ReLU()),
            ]
        )
    )

    out = model(sp_input)
    out_feats = jax.block_until_ready(out.features)  # [128, 32] bf16

    ref = _ref_forward(
        features,
        indices,
        (H, W),
        B,
        [
            (conv1.weight, conv1.bias, 3, 1),
            (conv2.weight, conv2.bias, 3, 1),
        ],
    )
    assert out_feats.shape == (indices.shape[0], 32)
    # bf16 operands + bf16 activation carry/outputs with f32 accumulation vs. f32 reference.
    assert jnp.allclose(out_feats.astype(jnp.float32), ref, rtol=8e-2, atol=8e-2), (
        float(jnp.max(jnp.abs(out_feats.astype(jnp.float32) - ref)))
    )

    # also exercise the standalone (non-fused) tiled ReLU kernel once
    r = jax.block_until_ready(relu_pallas(features))
    assert jnp.allclose(r, jnp.maximum(features, 0.0))

    print("KERNEL_OK")
</pallas_src>

<mosaic_0001>
module attributes {stable_mosaic.version = 11 : i64} {
  func.func @_subm_conv_kernel(%arg0: i32, %arg1: memref<128x36xbf16, #tpu.memory_space<vmem>>, %arg2: memref<36x16xbf16, #tpu.memory_space<vmem>>, %arg3: memref<1x16xf32, #tpu.memory_space<vmem>>, %arg4: memref<128x16xbf16, #tpu.memory_space<vmem>>) attributes {dimension_semantics = [#tpu.dimension_semantics<parallel>], iteration_bounds = array<i64: 1>, scalar_prefetch = 0 : i64, scratch_operands = 0 : i64, tpu.core_type = #tpu.core_type<tc>, window_params = [{transform_indices = @transform_0, window_bounds = array<i64: 128, 36>}, {pipeline_mode = #tpu.pipeline_mode<synchronous>, transform_indices = @transform_1, window_bounds = array<i64: 36, 16>}, {pipeline_mode = #tpu.pipeline_mode<synchronous>, transform_indices = @transform_2, window_bounds = array<i64: 1, 16>}, {transform_indices = @transform_3, window_bounds = array<i64: 128, 16>}]} {
    %c0 = arith.constant 0 : index
    %c0_0 = arith.constant 0 : index
    %0 = vector.load %arg1[%c0, %c0_0] : memref<128x36xbf16, #tpu.memory_space<vmem>>, vector<128x36xbf16>
    %c0_1 = arith.constant 0 : index
    %c0_2 = arith.constant 0 : index
    %1 = vector.load %arg2[%c0_1, %c0_2] : memref<36x16xbf16, #tpu.memory_space<vmem>>, vector<36x16xbf16>
    %cst = arith.constant dense<0.000000e+00> : vector<128x16xf32>
    %2 = tpu.matmul %0, %1, %cst {dimension_numbers = #tpu.dot_dimension_numbers<[1], [0], [0], [1], [0, 0, 1, 1], [], []>} : vector<128x36xbf16>, vector<36x16xbf16>, vector<128x16xf32> -> vector<128x16xf32>
    %c0_3 = arith.constant 0 : index
    %c0_4 = arith.constant 0 : index
    %3 = vector.load %arg3[%c0_3, %c0_4] : memref<1x16xf32, #tpu.memory_space<vmem>>, vector<1x16xf32>
    %4 = vector.broadcast %3 : vector<1x16xf32> to vector<128x16xf32>
    %5 = arith.addf %2, %4 : vector<128x16xf32>
    %cst_5 = arith.constant 0.000000e+00 : f32
    %6 = vector.broadcast %cst_5 : f32 to vector<128x16xf32>
    %7 = arith.maximumf %5, %6 : vector<128x16xf32>
    %8 = arith.truncf %7 : vector<128x16xf32> to vector<128x16xbf16>
    %c0_6 = arith.constant 0 : index
    %c0_7 = arith.constant 0 : index
    %9 = vector.load %arg4[%c0_6, %c0_7] : memref<128x16xbf16, #tpu.memory_space<vmem>>, vector<128x16xbf16>
    tpu.vector_store %arg4[%c0_6, %c0_7], %8 {strides = array<i32>} : memref<128x16xbf16, #tpu.memory_space<vmem>>, vector<128x16xbf16>,
    return
  }
  func.func @transform_0(%arg0: i32) -> (i32, i32) {
    %c0_i32 = arith.constant 0 : i32
    %c0_i32_0 = arith.constant 0 : i32
    return %arg0, %c0_i32 : i32, i32
  }
  func.func @transform_1(%arg0: i32) -> (i32, i32) {
    %c0_i32 = arith.constant 0 : i32
    %c0_i32_0 = arith.constant 0 : i32
    %c0_i32_1 = arith.constant 0 : i32
    return %c0_i32, %c0_i32_0 : i32, i32
  }
  func.func @transform_2(%arg0: i32) -> (i32, i32) {
    %c0_i32 = arith.constant 0 : i32
    %c0_i32_0 = arith.constant 0 : i32
    %c0_i32_1 = arith.constant 0 : i32
    return %c0_i32, %c0_i32_0 : i32, i32
  }
  func.func @transform_3(%arg0: i32) -> (i32, i32) {
    %c0_i32 = arith.constant 0 : i32
    %c0_i32_0 = arith.constant 0 : i32
    return %arg0, %c0_i32 : i32, i32
  }
}

</mosaic_0001>

<bundles_post_ra>
// kernel: tpu_custom_call.1
= control target key start
LH: loop header
LB: loop body
LE: loop exit
PB: predicated region body
PF: predicated region fallthrough
CT: control target
= control target key end

     0   :  { %vm98_vm0 = vcmask 293888   ;;  %vm123_vm1 = vcmask 1041408   ;;  %vm304_vm2 = vcmask 125952   ;;  %s557_s1 = inlined_call_operand.vmem [shape: bf16[36,16], index: 1, kind: input, shape index: {}]   ;;  %s558_s0 = inlined_call_operand.vmem [shape: bf16[128,36], index: 0, kind: input, shape index: {}]   ;;  %s559_s2 = inlined_call_operand.vmem [shape: f32[1,16], index: 2, kind: input, shape index: {}]   ;;  %s560_s3 = inlined_call_operand.vmem [shape: bf16[128,16], index: 3, kind: output, shape index: {}]  }
   0x1   :  { %v418_v0 = vld [vmem:[%s557_s1] sm:$0xff]   ;;  %v419_v1 = vld [vmem:[%s557_s1 + $0x8] sm:$0xff]   ;;  %v420_v2 = vld [vmem:[%s557_s1 + $0x10] ss:$0 sps:$4 sm:$0x33]  }
   0x2   :  { %388 = vmatprep.subr.bf16.mxu0 %v418_v0  ;;  %410 = vmatprep.subr.bf16.mxu1 %v418_v0  ;;  %v421_v3 = vld [vmem:[%s558_s0] sm:$0xff]   ;;  %v125_v5 = vsel %vm123_vm1, %v420_v2, 0  ;;  %v423_v6 = vld [vmem:[%s558_s0 + $0x8] sm:$0xff]   ;;  %v425_v8 = vld [vmem:[%s558_s0 + $0x10] sm:$0xff]  }
   0x3   :  { %389 = vmatpush3.bf16.msra.mxu0 %v418_v0  ;;  %413 = vmatpush3.bf16.msra.mxu1 %v418_v0  ;;  %v422_v4 = vld [vmem:[%s558_s0 + $0x20] sm:$0xff]   ;;  %v424_v7 = vld [vmem:[%s558_s0 + $0x28] sm:$0xff]   ;;  %v426_v9 = vld [vmem:[%s558_s0 + $0x30] sm:$0xff]  }
   0x4   :  { %390 = vmatprep.subr.bf16.mxu0 %v419_v1  ;;  %411 = vmatprep.subr.bf16.mxu1 %v419_v1  ;;  %v427_v10 = vld [vmem:[%s558_s0 + $0x18] sm:$0xff]   ;;  %v325_v12 = vld [vmem:[%s559_s2] ss:$0 sm:$0xff] }
   0x5   :  { %394 = vmatprep.mubr.msk.bf16.mxu0 %vm98_vm0, %v421_v3  ;;  %402 = vmatprep.mubr.msk.bf16.mxu1 %vm98_vm0, %v422_v4  ;;  %v428_v11 = vld [vmem:[%s558_s0 + $0x38] sm:$0xff]  }
   0x7   :  { %391 = vmatpush3.bf16.msra.mxu0 %v419_v1  ;;  %414 = vmatpush3.bf16.msra.mxu1 %v419_v1 }
   0x8   :  { %416 = vmatprep.subr.msk.bf16.mxu0 %vm123_vm1, %v420_v2  ;;  %417 = vmatprep.subr.msk.bf16.mxu1 %vm123_vm1, %v420_v2 }
   0xb   :  { %393 = vmatpush3.bf16.msra.mxu0 %v125_v5  ;;  %415 = vmatpush3.bf16.msra.mxu1 %v125_v5 }
   0xe   :  { %395 = vmatmul.mubr.msk.bf16.vlgmr.msra.gmra.mrb[0].mxu0 %vm98_vm0, %v423_v6  ;;  %403 = vmatmul.mubr.msk.bf16.vlgmr.msra.gmra.mrb[0].mxu1 %vm98_vm0, %v424_v7 }
   0xf   :  { %398 = vmatprep.mubr.msk.bf16.mxu0 %vm98_vm0, %v425_v8  ;;  %406 = vmatprep.mubr.msk.bf16.mxu1 %vm98_vm0, %v426_v9 }
  0x16   :  { %399 = vmatmul.mubr.msk.bf16.gmra.mrb[4].mxu0 %vm98_vm0, %v427_v10  ;;  %407 = vmatmul.mubr.msk.bf16.gmra.mrb[4].mxu1 %vm98_vm0, %v428_v11 }
  0xe1   :  { %v396_v13 = vpop.f32.mrb[0].mxu0  ;;  %v404_v14 = vpop.f32.mrb[0].mxu1 }
  0xe2   :  { %v170_v15 = vadd.f32 %v396_v13, %v325_v12  ;;  %v202_v16 = vadd.f32 %v404_v14, %v325_v12  ;;  %v161_v17 = vpop.f32.mrb[1].mxu0  ;;  %v193_v18 = vpop.f32.mrb[1].mxu1 }
  0xe3   :  { %v162_v19 = vadd.f32 %v325_v12, %v161_v17  ;;  %v194_v20 = vadd.f32 %v325_v12, %v193_v18  ;;  %v397_v21 = vpop.f32.mrb[2].mxu0  ;;  %v405_v22 = vpop.f32.mrb[2].mxu1 }
  0xe4   :  { %v226_v23 = vmax.f32 %v170_v15, 0.0  ;;  %v234_v24 = vmax.f32 %v202_v16, 0.0  ;;  %v173_v25 = vadd.f32 %v397_v21, %v325_v12  ;;  %v205_v26 = vadd.f32 %v405_v22, %v325_v12  ;;  %v164_v27 = vpop.f32.mrb[3].mxu0  ;;  %v196_v28 = vpop.f32.mrb[3].mxu1 }
  0xe5   :  { %v224_v29 = vmax.f32 %v162_v19, 0.0  ;;  %v232_v30 = vmax.f32 %v194_v20, 0.0  ;;  %v165_v31 = vadd.f32 %v325_v12, %v164_v27  ;;  %v197_v32 = vadd.f32 %v325_v12, %v196_v28 }
  0xe6   :  { %v363_v33 = vpack.c.bf16 %v226_v23, %v226_v23  ;;  %v371_v34 = vpack.c.bf16 %v234_v24, %v234_v24  ;;  %v227_v35 = vmax.f32 %v173_v25, 0.0  ;;  %v235_v36 = vmax.f32 %v205_v26, 0.0 }
  0xe7   :  { %v361_v37 = vpack.c.bf16 %v224_v29, %v224_v29  ;;  %v369_v38 = vpack.c.bf16 %v232_v30, %v232_v30  ;;  %v225_v39 = vmax.f32 %v165_v31, 0.0  ;;  %v233_v40 = vmax.f32 %v197_v32, 0.0 }
  0xe8   :  { %307 = vst.msk [vmem:[%s560_s3 + $0x8] sm:$0xf] %vm304_vm2, %v363_v33  ;;  %315 = vst.msk [vmem:[%s560_s3 + $0x28] sm:$0xf] %vm304_vm2, %v371_v34  ;;  %v364_v41 = vpack.c.bf16 %v227_v35, %v227_v35  ;;  %v372_v42 = vpack.c.bf16 %v235_v36, %v235_v36 }
  0xe9   :  { %305 = vst.msk [vmem:[%s560_s3] sm:$0xf] %vm304_vm2, %v361_v37  ;;  %313 = vst.msk [vmem:[%s560_s3 + $0x20] sm:$0xf] %vm304_vm2, %v369_v38  ;;  %v362_v43 = vpack.c.bf16 %v225_v39, %v225_v39  ;;  %v370_v44 = vpack.c.bf16 %v233_v40, %v233_v40  ;;  %v400_v45 = vpop.f32.mrb[4].mxu0  ;;  %v408_v46 = vpop.f32.mrb[4].mxu1 }
  0xea   :  { %308 = vst.msk [vmem:[%s560_s3 + $0xc] sm:$0xf] %vm304_vm2, %v364_v41  ;;  %316 = vst.msk [vmem:[%s560_s3 + $0x2c] sm:$0xf] %vm304_vm2, %v372_v42  ;;  %v186_v47 = vadd.f32 %v400_v45, %v325_v12  ;;  %v218_v48 = vadd.f32 %v408_v46, %v325_v12  ;;  %v177_v49 = vpop.f32.mrb[5].mxu0  ;;  %v209_v50 = vpop.f32.mrb[5].mxu1 }
  0xeb   :  { %306 = vst.msk [vmem:[%s560_s3 + $0x4] sm:$0xf] %vm304_vm2, %v362_v43  ;;  %314 = vst.msk [vmem:[%s560_s3 + $0x24] sm:$0xf] %vm304_vm2, %v370_v44  ;;  %v178_v51 = vadd.f32 %v325_v12, %v177_v49  ;;  %v210_v52 = vadd.f32 %v325_v12, %v209_v50  ;;  %v401_v53 = vpop.f32.mrb[6].mxu0  ;;  %v409_v54 = vpop.f32.mrb[6].mxu1 }
  0xec   :  { %v230_v55 = vmax.f32 %v186_v47, 0.0  ;;  %v238_v56 = vmax.f32 %v218_v48, 0.0  ;;  %v189_v57 = vadd.f32 %v401_v53, %v325_v12  ;;  %v221_v58 = vadd.f32 %v409_v54, %v325_v12  ;;  %v180_v59 = vpop.f32.mrb[7].mxu0  ;;  %v212_v60 = vpop.f32.mrb[7].mxu1 }
  0xed   :  { %v228_v61 = vmax.f32 %v178_v51, 0.0  ;;  %v236_v62 = vmax.f32 %v210_v52, 0.0  ;;  %v181_v63 = vadd.f32 %v325_v12, %v180_v59  ;;  %v213_v0 = vadd.f32 %v325_v12, %v212_v60 }
  0xee   :  { %v367_v1 = vpack.c.bf16 %v230_v55, %v230_v55  ;;  %v375_v2 = vpack.c.bf16 %v238_v56, %v238_v56  ;;  %v231_v3 = vmax.f32 %v189_v57, 0.0  ;;  %v239_v4 = vmax.f32 %v221_v58, 0.0 }
  0xef   :  { %v365_v5 = vpack.c.bf16 %v228_v61, %v228_v61  ;;  %v373_v6 = vpack.c.bf16 %v236_v62, %v236_v62  ;;  %v229_v7 = vmax.f32 %v181_v63, 0.0  ;;  %v237_v8 = vmax.f32 %v213_v0, 0.0 }
  0xf0   :  { %311 = vst.msk [vmem:[%s560_s3 + $0x18] sm:$0xf] %vm304_vm2, %v367_v1  ;;  %319 = vst.msk [vmem:[%s560_s3 + $0x38] sm:$0xf] %vm304_vm2, %v375_v2  ;;  %v368_v9 = vpack.c.bf16 %v231_v3, %v231_v3  ;;  %v376_v10 = vpack.c.bf16 %v239_v4, %v239_v4 }
  0xf1   :  { %309 = vst.msk [vmem:[%s560_s3 + $0x10] sm:$0xf] %vm304_vm2, %v365_v5  ;;  %317 = vst.msk [vmem:[%s560_s3 + $0x30] sm:$0xf] %vm304_vm2, %v373_v6  ;;  %v366_v11 = vpack.c.bf16 %v229_v7, %v229_v7  ;;  %v374_v12 = vpack.c.bf16 %v237_v8, %v237_v8 }
  0xf2   :  { %312 = vst.msk [vmem:[%s560_s3 + $0x1c] sm:$0xf] %vm304_vm2, %v368_v9  ;;  %320 = vst.msk [vmem:[%s560_s3 + $0x3c] sm:$0xf] %vm304_vm2, %v376_v10 }
  0xf3   :  { %310 = vst.msk [vmem:[%s560_s3 + $0x14] sm:$0xf] %vm304_vm2, %v366_v11  ;;  %318 = vst.msk [vmem:[%s560_s3 + $0x34] sm:$0xf] %vm304_vm2, %v374_v12 }

</bundles_post_ra>
